<compile_context>
chip_gen: v7x
topology: tpu7x:2x2x1
jax: 0.10.0
libtpu: 0.0.40
codegen_flags: <defaults>
</compile_context>

<pallas_src>
import functools

import jax
import jax.numpy as jnp
from jax.experimental import pallas as pl
from jax.experimental.pallas import tpu as pltpu


def _round_up(x, m):
    return ((x + m - 1) // m) * m


def _full_nn_kernel_train(x_ref, m1_ref, m2_ref, w1_ref, b1_ref, w2_ref, b2_ref, o_ref):
    # dropout(x): mask is pre-scaled by 1/(1-p) on the host (inverted dropout).
    x = x_ref[...] * m1_ref[...]
    # fc1: (TILE_B, D) @ (D, H) + (1, H)
    h = jnp.dot(x, w1_ref[...], preferred_element_type=jnp.float32) + b1_ref[...]
    # dropout(fc1(x))
    h = h * m2_ref[...]
    # relu
    h = jnp.maximum(h, 0.0)
    # fc2: (TILE_B, H) @ (H, C_pad) + (1, C_pad)  -- lane-dense (C_pad % 128 == 0)
    out = jnp.dot(h, w2_ref[...], preferred_element_type=jnp.float32) + b2_ref[...]
    o_ref[...] = out.astype(o_ref.dtype)


def _full_nn_kernel_eval(x_ref, w1_ref, b1_ref, w2_ref, b2_ref, o_ref):
    h = jnp.dot(x_ref[...], w1_ref[...], preferred_element_type=jnp.float32) + b1_ref[...]
    h = jnp.maximum(h, 0.0)
    out = jnp.dot(h, w2_ref[...], preferred_element_type=jnp.float32) + b2_ref[...]
    o_ref[...] = out.astype(o_ref.dtype)


def full_nn_forward(x, w1, b1, w2, b2, *, dropout_rate=0.5, training=False,
                    rng_key=None):
    """Full_NN forward.

    x  : (B, D_in) f32
    w1 : (D_in, H) f32   (pre-transposed: in-features first)
    b1 : (H,)      f32
    w2 : (H, C)    f32
    b2 : (C,)      f32
    """
    B, D = x.shape
    H = w1.shape[1]
    C = w2.shape[1]

    # ---- layout plumbing (wrapper side) -----------------------------------
    # Lane-dense output: pad C up to a multiple of 128 with zero weight cols.
    C_pad = _round_up(C, 128)
    if C_pad != C:
        w2 = jnp.pad(w2, ((0, 0), (0, C_pad - C)))
        b2 = jnp.pad(b2, (0, C_pad - C))

    # Batch tiling: >=8 sublanes per tile, cap at 128 rows per grid step.
    TILE_B = 128 if B >= 128 else _round_up(B, 8)
    B_pad = _round_up(B, TILE_B)
    if B_pad != B:
        x = jnp.pad(x, ((0, B_pad - B), (0, 0)))
    n_tiles = B_pad // TILE_B

    b1_2d = b1.reshape(1, H)
    b2_2d = b2.reshape(1, C_pad)

    use_dropout = bool(training) and float(dropout_rate) > 0.0
    keep = 1.0 - float(dropout_rate)

    # Common specs: weights/biases use constant index_maps -> VMEM-resident.
    x_spec = pl.BlockSpec((TILE_B, D), lambda i: (i, 0))
    w1_spec = pl.BlockSpec((D, H), lambda i: (0, 0))
    b1_spec = pl.BlockSpec((1, H), lambda i: (0, 0))
    w2_spec = pl.BlockSpec((H, C_pad), lambda i: (0, 0))
    b2_spec = pl.BlockSpec((1, C_pad), lambda i: (0, 0))
    out_spec = pl.BlockSpec((TILE_B, C_pad), lambda i: (i, 0))

    flops = 2 * B_pad * D * H + 2 * B_pad * H * C_pad
    bytes_accessed = 4 * (B_pad * D + D * H + H + H * C_pad + C_pad
                          + B_pad * C_pad
                          + (B_pad * D + B_pad * H if use_dropout else 0))
    cost = pl.CostEstimate(flops=flops, transcendentals=0,
                           bytes_accessed=bytes_accessed)

    if use_dropout:
        if rng_key is None:
            rng_key = jax.random.PRNGKey(0)
        k1, k2 = jax.random.split(rng_key)
        # Inverted dropout masks, pre-scaled by 1/keep (PyTorch semantics).
        m1 = (jax.random.bernoulli(k1, keep, (B_pad, D)).astype(jnp.float32)
              * jnp.float32(1.0 / keep))
        m2 = (jax.random.bernoulli(k2, keep, (B_pad, H)).astype(jnp.float32)
              * jnp.float32(1.0 / keep))
        m1_spec = pl.BlockSpec((TILE_B, D), lambda i: (i, 0))
        m2_spec = pl.BlockSpec((TILE_B, H), lambda i: (i, 0))

        out_pad = pl.pallas_call(
            _full_nn_kernel_train,
            out_shape=jax.ShapeDtypeStruct((B_pad, C_pad), jnp.float32),
            grid=(n_tiles,),
            in_specs=[x_spec, m1_spec, m2_spec, w1_spec, b1_spec, w2_spec, b2_spec],
            out_specs=out_spec,
            compiler_params=pltpu.CompilerParams(
                dimension_semantics=("parallel",)),
            cost_estimate=cost,
        )(x, m1, m2, w1, b1_2d, w2, b2_2d)
    else:
        out_pad = pl.pallas_call(
            _full_nn_kernel_eval,
            out_shape=jax.ShapeDtypeStruct((B_pad, C_pad), jnp.float32),
            grid=(n_tiles,),
            in_specs=[x_spec, w1_spec, b1_spec, w2_spec, b2_spec],
            out_specs=out_spec,
            compiler_params=pltpu.CompilerParams(
                dimension_semantics=("parallel",)),
            cost_estimate=cost,
        )(x, w1, b1_2d, w2, b2_2d)

    # Slice padded rows / padded classes back out.
    return out_pad[:B, :C]


def full_nn_reference_eval(x, w1, b1, w2, b2):
    """Pure-JAX reference, eval mode (dropout = identity)."""
    h = jnp.maximum(x @ w1 + b1, 0.0)
    return h @ w2 + b2


if __name__ == "__main__":
    # Small shapes consistent with the module: batch=8, input_size=32,
    # hidden_size=32, num_classes=16.
    B, D_IN, HIDDEN, N_CLASSES = 8, 32, 32, 16
    DROPOUT = 0.5

    key = jax.random.PRNGKey(0)
    kx, kw1, kb1, kw2, kb2, kdrop = jax.random.split(key, 6)

    x = jax.random.normal(kx, (B, D_IN), dtype=jnp.float32)

    # PyTorch-style init: U(-1/sqrt(fan_in), 1/sqrt(fan_in)),
    # stored pre-transposed as (in, out).
    bound1 = 1.0 / jnp.sqrt(D_IN)
    w1 = jax.random.uniform(kw1, (D_IN, HIDDEN), jnp.float32, -bound1, bound1)
    b1 = jax.random.uniform(kb1, (HIDDEN,), jnp.float32, -bound1, bound1)
    bound2 = 1.0 / jnp.sqrt(HIDDEN)
    w2 = jax.random.uniform(kw2, (HIDDEN, N_CLASSES), jnp.float32, -bound2, bound2)
    b2 = jax.random.uniform(kb2, (N_CLASSES,), jnp.float32, -bound2, bound2)

    # Training mode (dropout active via host-generated inverted-dropout masks).
    out_train = full_nn_forward(x, w1, b1, w2, b2,
                                dropout_rate=DROPOUT, training=True,
                                rng_key=kdrop)
    out_train = jax.block_until_ready(out_train)
    assert out_train.shape == (B, N_CLASSES)
    assert bool(jnp.all(jnp.isfinite(out_train)))

    # Eval mode (dropout = identity) -- check against pure-JAX reference.
    out_eval = full_nn_forward(x, w1, b1, w2, b2,
                               dropout_rate=DROPOUT, training=False)
    out_eval = jax.block_until_ready(out_eval)
    ref = full_nn_reference_eval(x, w1, b1, w2, b2)
    assert out_eval.shape == (B, N_CLASSES)
    assert jnp.allclose(out_eval, ref, atol=1e-5, rtol=1e-5)

    print("KERNEL_OK")
</pallas_src>

<mosaic_0001>
module attributes {stable_mosaic.version = 11 : i64} {
  func.func @_full_nn_kernel_train(%arg0: i32, %arg1: memref<8x32xf32, #tpu.memory_space<vmem>>, %arg2: memref<8x32xf32, #tpu.memory_space<vmem>>, %arg3: memref<8x32xf32, #tpu.memory_space<vmem>>, %arg4: memref<32x32xf32, #tpu.memory_space<vmem>>, %arg5: memref<1x32xf32, #tpu.memory_space<vmem>>, %arg6: memref<32x128xf32, #tpu.memory_space<vmem>>, %arg7: memref<1x128xf32, #tpu.memory_space<vmem>>, %arg8: memref<8x128xf32, #tpu.memory_space<vmem>>) attributes {dimension_semantics = [#tpu.dimension_semantics<parallel>], iteration_bounds = array<i64: 1>, scalar_prefetch = 0 : i64, scratch_operands = 0 : i64, tpu.core_type = #tpu.core_type<tc>, window_params = [{transform_indices = @transform_0, window_bounds = array<i64: 8, 32>}, {transform_indices = @transform_1, window_bounds = array<i64: 8, 32>}, {transform_indices = @transform_2, window_bounds = array<i64: 8, 32>}, {pipeline_mode = #tpu.pipeline_mode<synchronous>, transform_indices = @transform_3, window_bounds = array<i64: 32, 32>}, {pipeline_mode = #tpu.pipeline_mode<synchronous>, transform_indices = @transform_4, window_bounds = array<i64: 1, 32>}, {pipeline_mode = #tpu.pipeline_mode<synchronous>, transform_indices = @transform_5, window_bounds = array<i64: 32, 128>}, {pipeline_mode = #tpu.pipeline_mode<synchronous>, transform_indices = @transform_6, window_bounds = array<i64: 1, 128>}, {transform_indices = @transform_7, window_bounds = array<i64: 8, 128>}]} {
    %c0 = arith.constant 0 : index
    %c0_0 = arith.constant 0 : index
    %0 = vector.load %arg1[%c0, %c0_0] : memref<8x32xf32, #tpu.memory_space<vmem>>, vector<8x32xf32>
    %c0_1 = arith.constant 0 : index
    %c0_2 = arith.constant 0 : index
    %1 = vector.load %arg2[%c0_1, %c0_2] : memref<8x32xf32, #tpu.memory_space<vmem>>, vector<8x32xf32>
    %2 = arith.mulf %0, %1 : vector<8x32xf32>
    %c0_3 = arith.constant 0 : index
    %c0_4 = arith.constant 0 : index
    %3 = vector.load %arg4[%c0_3, %c0_4] : memref<32x32xf32, #tpu.memory_space<vmem>>, vector<32x32xf32>
    %cst = arith.constant dense<0.000000e+00> : vector<8x32xf32>
    %4 = tpu.matmul %2, %3, %cst {dimension_numbers = #tpu.dot_dimension_numbers<[1], [0], [0], [1], [0, 0, 1, 1], [], []>} : vector<8x32xf32>, vector<32x32xf32>, vector<8x32xf32> -> vector<8x32xf32>
    %c0_5 = arith.constant 0 : index
    %c0_6 = arith.constant 0 : index
    %5 = vector.load %arg5[%c0_5, %c0_6] : memref<1x32xf32, #tpu.memory_space<vmem>>, vector<1x32xf32>
    %6 = vector.broadcast %5 : vector<1x32xf32> to vector<8x32xf32>
    %7 = arith.addf %4, %6 : vector<8x32xf32>
    %c0_7 = arith.constant 0 : index
    %c0_8 = arith.constant 0 : index
    %8 = vector.load %arg3[%c0_7, %c0_8] : memref<8x32xf32, #tpu.memory_space<vmem>>, vector<8x32xf32>
    %9 = arith.mulf %7, %8 : vector<8x32xf32>
    %cst_9 = arith.constant 0.000000e+00 : f32
    %10 = vector.broadcast %cst_9 : f32 to vector<8x32xf32>
    %11 = arith.maximumf %9, %10 : vector<8x32xf32>
    %c0_10 = arith.constant 0 : index
    %c0_11 = arith.constant 0 : index
    %12 = vector.load %arg6[%c0_10, %c0_11] : memref<32x128xf32, #tpu.memory_space<vmem>>, vector<32x128xf32>
    %cst_12 = arith.constant dense<0.000000e+00> : vector<8x128xf32>
    %13 = tpu.matmul %11, %12, %cst_12 {dimension_numbers = #tpu.dot_dimension_numbers<[1], [0], [0], [1], [0, 0, 1, 1], [], []>} : vector<8x32xf32>, vector<32x128xf32>, vector<8x128xf32> -> vector<8x128xf32>
    %c0_13 = arith.constant 0 : index
    %c0_14 = arith.constant 0 : index
    %14 = vector.load %arg7[%c0_13, %c0_14] : memref<1x128xf32, #tpu.memory_space<vmem>>, vector<1x128xf32>
    %15 = vector.broadcast %14 : vector<1x128xf32> to vector<8x128xf32>
    %16 = arith.addf %13, %15 : vector<8x128xf32>
    %c0_15 = arith.constant 0 : index
    %c0_16 = arith.constant 0 : index
    %17 = vector.load %arg8[%c0_15, %c0_16] : memref<8x128xf32, #tpu.memory_space<vmem>>, vector<8x128xf32>
    tpu.vector_store %arg8[%c0_15, %c0_16], %16 {strides = array<i32>} : memref<8x128xf32, #tpu.memory_space<vmem>>, vector<8x128xf32>,
    return
  }
  func.func @transform_0(%arg0: i32) -> (i32, i32) {
    %c0_i32 = arith.constant 0 : i32
    %c0_i32_0 = arith.constant 0 : i32
    return %arg0, %c0_i32 : i32, i32
  }
  func.func @transform_1(%arg0: i32) -> (i32, i32) {
    %c0_i32 = arith.constant 0 : i32
    %c0_i32_0 = arith.constant 0 : i32
    return %arg0, %c0_i32 : i32, i32
  }
  func.func @transform_2(%arg0: i32) -> (i32, i32) {
    %c0_i32 = arith.constant 0 : i32
    %c0_i32_0 = arith.constant 0 : i32
    return %arg0, %c0_i32 : i32, i32
  }
  func.func @transform_3(%arg0: i32) -> (i32, i32) {
    %c0_i32 = arith.constant 0 : i32
    %c0_i32_0 = arith.constant 0 : i32
    %c0_i32_1 = arith.constant 0 : i32
    return %c0_i32, %c0_i32_0 : i32, i32
  }
  func.func @transform_4(%arg0: i32) -> (i32, i32) {
    %c0_i32 = arith.constant 0 : i32
    %c0_i32_0 = arith.constant 0 : i32
    %c0_i32_1 = arith.constant 0 : i32
    return %c0_i32, %c0_i32_0 : i32, i32
  }
  func.func @transform_5(%arg0: i32) -> (i32, i32) {
    %c0_i32 = arith.constant 0 : i32
    %c0_i32_0 = arith.constant 0 : i32
    %c0_i32_1 = arith.constant 0 : i32
    return %c0_i32, %c0_i32_0 : i32, i32
  }
  func.func @transform_6(%arg0: i32) -> (i32, i32) {
    %c0_i32 = arith.constant 0 : i32
    %c0_i32_0 = arith.constant 0 : i32
    %c0_i32_1 = arith.constant 0 : i32
    return %c0_i32, %c0_i32_0 : i32, i32
  }
  func.func @transform_7(%arg0: i32) -> (i32, i32) {
    %c0_i32 = arith.constant 0 : i32
    %c0_i32_0 = arith.constant 0 : i32
    return %arg0, %c0_i32 : i32, i32
  }
}

</mosaic_0001>

<bundles_post_ra>
// kernel: tpu_custom_call.1
= control target key start
LH: loop header
LB: loop body
LE: loop exit
PB: predicated region body
PF: predicated region fallthrough
CT: control target
= control target key end

     0   :  { %12 = vsyncpa [#allocation3], 0  ;;  %s625_s0 = inlined_call_operand.hbm [shape: f32[8,32], index: 0, kind: input, shape index: {}]   ;;  %s626_s1 = inlined_call_operand.hbm [shape: f32[8,32], index: 1, kind: input, shape index: {}]   ;;  %s627_s2 = inlined_call_operand.hbm [shape: f32[8,32], index: 2, kind: input, shape index: {}]   ;;  %s628_s3 = inlined_call_operand.hbm [shape: f32[32,32], index: 3, kind: input, shape index: {}]   ;;  %s629_s4 = inlined_call_operand.vmem [shape: f32[1,32], index: 4, kind: input, shape index: {}]   ;;  %s630_s5 = inlined_call_operand.hbm [shape: f32[32,128], index: 5, kind: input, shape index: {}]   ;;  %s631_s6 = inlined_call_operand.vmem [shape: f32[1,128], index: 6, kind: input, shape index: {}]   ;;  %s632_s7 = inlined_call_operand.hbm [shape: f32[8,128], index: 7, kind: output, shape index: {}]  }
   0x1   :  { %13 = vsyncpa [#allocation6], 0 }
   0x2   :  { %14 = vsyncpa [#allocation9], 0 }
   0x3   :  { %15 = vsyncpa [#allocation4], 0  ;;  %s481_s24 = smov [#allocation5]   ;;  %s482_s26 = smov [#allocation8]  }
   0x4   :  { %s32_s25 = sshll.u32 %s481_s24, 4  ;;  %s51_s27 = sshll.u32 %s482_s26, 4  ;;  %s33_s25 = int_to_ptr.vmem [resolvable:$true] %s32_s25  ;;  %s532_s27 = int_to_ptr.vmem [resolvable:$true] %s51_s27 }
   0x5   :  { %s341_s30 = scalar_lea.hbm %s626_s1, 128 }
   0x6   :  { %p342_p0 = scmp.ne.s32.totalorder %s626_s1, %s341_s30  ;;  %p345_p1 = scmp.lt.u32.totalorder %s341_s30, %s626_s1 }
   0x8   :  { %p347_p2 = pnand %p345_p1, %p342_p0 }
   0xa   :  { %350 = shalt.err (!%p347_p2)
}
   0xb   :  { %s351_s12 = scalar_lea.vmem %s33_s25, 128  ;;  %p356_p4 = scmp.lt.s32.totalorder %s33_s25, %s33_s25 }
   0xc   :  { %p352_p3 = scmp.ne.s32.totalorder %s33_s25, %s351_s12  ;;  %p357_p5 = scmp.lt.s32.totalorder %s351_s12, %s351_s12 }
   0xe   :  { %p358_p6 = por %p357_p5, %p356_p4 }
  0x10   :  { %p359_p7 = pnand %p358_p6, %p352_p3 }
  0x12   :  { %362 = shalt.err (!%p359_p7)
}
  0x13   :  { %35 = dma.hbm_to_vmem [thread:$0]  %s626_s1, 128, %s33_s25, [#allocation6]  }
  0x14   :  { %s363_s17 = scalar_lea.hbm %s628_s3, 512 }
  0x15   :  { %p364_p8 = scmp.ne.s32.totalorder %s628_s3, %s363_s17  ;;  %p367_p9 = scmp.lt.u32.totalorder %s363_s17, %s628_s3 }
  0x17   :  { %p369_p10 = pnand %p367_p9, %p364_p8 }
  0x19   :  { %372 = shalt.err (!%p369_p10)
}
  0x1a   :  { %s373_s22 = scalar_lea.vmem %s532_s27, 512  ;;  %p378_p12 = scmp.lt.s32.totalorder %s532_s27, %s532_s27 }
  0x1b   :  { %p374_p11 = scmp.ne.s32.totalorder %s532_s27, %s373_s22  ;;  %p379_p13 = scmp.lt.s32.totalorder %s373_s22, %s373_s22 }
  0x1d   :  { %p380_p0 = por %p379_p13, %p378_p12 }
  0x1f   :  { %p381_p1 = pnand %p380_p0, %p374_p11 }
  0x21   :  { %384 = shalt.err (!%p381_p1)
}
  0x22   :  { %s483_s1 = smov 128   ;;  %s484_s23 = smov 8  }
  0x23   :  { %57 = dma.hbm_to_vmem [thread:$0]  %s628_s3, 512, %s532_s27, [#allocation9], %s483_s1, %s483_s1, %s484_s23  }
  0x24   :  { %s485_s26 = smov [#allocation2]   ;;  %s486_s29 = smov [#allocation7]  }
  0x25   :  { %s22_s28 = sshll.u32 %s485_s26, 4  ;;  %s42_s30 = sshll.u32 %s486_s29, 4  ;;  %s23_s28 = int_to_ptr.vmem [resolvable:$true] %s22_s28  ;;  %s43_s30 = int_to_ptr.vmem [resolvable:$true] %s42_s30 }
  0x26   :  { %s385_s10 = scalar_lea.hbm %s625_s0, 128 }
  0x27   :  { %p386_p2 = scmp.ne.s32.totalorder %s625_s0, %s385_s10  ;;  %p389_p3 = scmp.lt.u32.totalorder %s385_s10, %s625_s0 }
  0x29   :  { %p391_p4 = pnand %p389_p3, %p386_p2 }
  0x2b   :  { %394 = shalt.err (!%p391_p4)
}
  0x2c   :  { %s395_s3 = scalar_lea.vmem %s23_s28, 128  ;;  %p400_p6 = scmp.lt.s32.totalorder %s23_s28, %s23_s28 }
  0x2d   :  { %p396_p5 = scmp.ne.s32.totalorder %s23_s28, %s395_s3  ;;  %p401_p7 = scmp.lt.s32.totalorder %s395_s3, %s395_s3 }
  0x2f   :  { %p402_p8 = por %p401_p7, %p400_p6 }
  0x31   :  { %p403_p9 = pnand %p402_p8, %p396_p5 }
  0x33   :  { %406 = shalt.err (!%p403_p9)
}
  0x34   :  { %25 = dma.hbm_to_vmem [thread:$0]  %s625_s0, 128, %s23_s28, [#allocation3]  }
  0x35   :  { %s407_s18 = scalar_lea.hbm %s627_s2, 128 }
  0x36   :  { %p408_p10 = scmp.ne.s32.totalorder %s627_s2, %s407_s18  ;;  %p411_p11 = scmp.lt.u32.totalorder %s407_s18, %s627_s2 }
  0x38   :  { %p413_p12 = pnand %p411_p11, %p408_p10 }
  0x3a   :  { %416 = shalt.err (!%p413_p12)
}
  0x3b   :  { %s417_s24 = scalar_lea.vmem %s43_s30, 128  ;;  %p422_p0 = scmp.lt.s32.totalorder %s43_s30, %s43_s30 }
  0x3c   :  { %p418_p13 = scmp.ne.s32.totalorder %s43_s30, %s417_s24  ;;  %p423_p1 = scmp.lt.s32.totalorder %s417_s24, %s417_s24 }
  0x3e   :  { %p424_p2 = por %p423_p1, %p422_p0 }
  0x40   :  { %p425_p3 = pnand %p424_p2, %p418_p13 }
  0x42   :  { %428 = shalt.err (!%p425_p3)
}
  0x43   :  { %45 = dma.hbm_to_vmem [thread:$0]  %s627_s2, 128, %s43_s30, [#allocation6]  }
  0x44   :  { %s487_s26 = smov [#allocation10]   ;;  %s429_s9 = scalar_lea.hbm %s630_s5, 512 }
  0x45   :  { %s65_s28 = sshll.u32 %s487_s26, 4  ;;  %p430_p4 = scmp.ne.s32.totalorder %s630_s5, %s429_s9  ;;  %s66_s28 = int_to_ptr.vmem [resolvable:$true] %s65_s28 }
  0x46   :  { %p433_p5 = scmp.lt.u32.totalorder %s429_s9, %s630_s5 }
  0x48   :  { %p435_p6 = pnand %p433_p5, %p430_p4 }
  0x4a   :  { %438 = shalt.err (!%p435_p6)
}
  0x4b   :  { %s439_s14 = scalar_lea.vmem %s66_s28, 512  ;;  %p444_p8 = scmp.lt.s32.totalorder %s66_s28, %s66_s28 }
  0x4c   :  { %p440_p7 = scmp.ne.s32.totalorder %s66_s28, %s439_s14  ;;  %p445_p9 = scmp.lt.s32.totalorder %s439_s14, %s439_s14 }
  0x4e   :  { %p446_p10 = por %p445_p9, %p444_p8 }
  0x50   :  { %p447_p11 = pnand %p446_p10, %p440_p7 }
  0x52   :  { %450 = shalt.err (!%p447_p11)
}
  0x53   :  { %71 = dma.hbm_to_vmem [thread:$0]  %s630_s5, 512, %s66_s28, [#allocation9], %s483_s1, %s483_s1, %s484_s23  }
  0x54   :  { %473 = dma.done.wait [#allocation3], 128  }
  0x55   :  { %474 = vsyncadd [#allocation3], 4294967168 }
  0x56   :  { %475 = dma.done.wait [#allocation6], 256  }
  0x57   :  { %476 = vsyncadd [#allocation6], 4294967040 }
  0x58   :  { %477 = dma.done.wait [#allocation9], 1024  }
  0x59   :  { %478 = vsyncadd [#allocation9], 4294966272  ;;  %v488_v0 = vmov 0.0|0.0   ;;  %vm489_vm0 = vmmov 0   ;;  %v490_v1 = vmov 0.0   ;;  %v92_v2 = vld [vmem:[#allocation8] sm:$0xff] }
  0x5a   :  { %318 = vmatprep.subr.bf16.mxu0 %v488_v0  ;;  %304 = vmatprep.mubr.msk.f32.mxu0 %vm489_vm0, %v490_v1  ;;  %v93_v3 = vld [vmem:[#allocation8 + $0x8] sm:$0xff]  ;;  %v94_v4 = vld [vmem:[#allocation8 + $0x10] sm:$0xff]  ;;  %v95_v6 = vld [vmem:[#allocation8 + $0x18] sm:$0xff]  ;;  %vm103_vm1 = vcmask 261120   ;;  %s491_s27 = smov [#allocation11]  }
  0x5b   :  { %324 = vmatprep.subr.bf16.mxu1 %v488_v0  ;;  %315 = vmatprep.mubr.msk.f32.mxu1 %vm489_vm0, %v490_v1  ;;  %v319_v5 = vpack.c.bf16 %v93_v3, %v92_v2  ;;  %v322_v7 = vpack.c.bf16 %v95_v6, %v94_v4  ;;  %v89_v8 = vld [vmem:[#allocation2] sm:$0xff]  ;;  %v90_v9 = vld [vmem:[#allocation5] sm:$0xff]  ;;  %v180_v11 = vld [vmem:[#allocation10] sm:$0xff]  ;;  %s271_s15 = sshll.u32 %s491_s27, 4  ;;  %s272_s15 = int_to_ptr.vmem [resolvable:$true] %s271_s15 }
  0x5c   :  { %v91_v10 = vmul.f32 %v90_v9, %v89_v8  ;;  %v181_v12 = vld [vmem:[#allocation10 + $0x8] sm:$0xff]  ;;  %v182_v14 = vld [vmem:[#allocation10 + $0x10] sm:$0xff]  ;;  %v183_v15 = vld [vmem:[#allocation10 + $0x18] sm:$0xff]  ;;  %p456_p13 = scmp.lt.s32.totalorder %s272_s15, %s272_s15 }
  0x5d   :  { %320 = vmatpush3.bf16.msra.mxu0 %v319_v5  ;;  %v325_v13 = vpack.c.bf16 %v181_v12, %v180_v11  ;;  %v328_v16 = vpack.c.bf16 %v183_v15, %v182_v14  ;;  %v282_v17 = vld [vmem:[%s629_s4] ss:$0 sm:$0xff]  ;;  %v177_v19 = vld [vmem:[#allocation7] sm:$0xff]  ;;  %s451_s4 = scalar_lea.vmem %s272_s15, 128 }
  0x5e   :  { %321 = vmatprep.subr.bf16.mxu0 %v488_v0  ;;  %v284_v24 = vld [vmem:[%s631_s6] ss:$0 sm:$0xff]  ;;  %p452_p12 = scmp.ne.s32.totalorder %s272_s15, %s451_s4  ;;  %p457_p0 = scmp.lt.s32.totalorder %s451_s4, %s451_s4 }
  0x5f   :  { %326 = vmatpush3.bf16.msra.mxu1 %v325_v13 }
  0x60   :  { %327 = vmatprep.subr.bf16.mxu1 %v488_v0  ;;  %p458_p1 = por %p457_p0, %p456_p13 }
  0x61   :  { %323 = vmatpush3.bf16.msra.mxu0 %v322_v7 }
  0x62   :  { %p459_p2 = pnand %p458_p1, %p452_p12 }
  0x63   :  { %329 = vmatpush3.bf16.msra.mxu1 %v328_v16 }
  0x64   :  { %305 = vmatmul.mubr.msk.f32.vlgmr.msra.gmra.mrb[0].mxu0 %vm103_vm1, %v91_v10 }
 0x137   :  { %v173_v18 = vpop.f32.mrb[0].mxu0 }
 0x138   :  { %v174_v20 = vadd.f32 %v282_v17, %v173_v18  ;;  %v306_v21 = vpop.f32.mrb[1].mxu0 }
 0x13a   :  { %v178_v22 = vmul.f32 %v177_v19, %v174_v20 }
 0x13c   :  { %v179_v23 = vmax.f32 %v178_v22, 0.0 }
 0x13e   :  { %316 = vmatmul.mubr.msk.f32.vlgmr.msra.gmra.mrb[0].mxu1 %vm103_vm1, %v179_v23 }
 0x211   :  { %v260_v25 = vpop.f32.mrb[0].mxu1 }
 0x212   :  { %v261_v26 = vadd.f32 %v284_v24, %v260_v25  ;;  %v317_v27 = vpop.f32.mrb[1].mxu1 }
 0x214   :  { %264 = vst [vmem:[#allocation11] sm:$0xff] %v261_v26 }
 0x215   :  { %462 = shalt.err (!%p459_p2)
}
 0x216   :  { %s463_s18 = scalar_lea.hbm %s632_s7, 128 }
 0x217   :  { %p464_p3 = scmp.ne.s32.totalorder %s632_s7, %s463_s18  ;;  %p467_p4 = scmp.lt.u32.totalorder %s463_s18, %s632_s7 }
 0x219   :  { %p469_p5 = pnand %p467_p4, %p464_p3 }
 0x21b   :  { %472 = shalt.err (!%p469_p5)
}
 0x21c   :  { %274 = dma.vmem_to_hbm [thread:$0]  %s272_s15, 128, %s632_s7, [#allocation4]  }
 0x21d   :  { %479 = dma.done.wait [#allocation4], 128  }
 0x21e   :  { %480 = vsyncadd [#allocation4], 4294967168 }
 0x21f   :  { %278 = vsyncpa [#allocation3], 1 }
 0x220   :  { %279 = vsyncpa [#allocation6], 1 }
 0x221   :  { %280 = vsyncpa [#allocation9], 1 }
 0x222   :  { %281 = vsyncpa [#allocation4], 1 }

</bundles_post_ra>
